<compile_context>
chip_gen: v7x
topology: tpu7x:2x2x1
jax: 0.10.0
libtpu: 0.0.40
codegen_flags: <defaults>
</compile_context>

<pallas_src>
import functools
import math

import jax
import jax.numpy as jnp
from jax.experimental import pallas as pl
from jax.experimental.pallas import tpu as pltpu  # noqa: F401  (kept for parity / future tiling)


def _leaky_relu(x, slope=0.01):
    # F.leaky_relu default negative_slope = 0.01
    return jnp.where(x > 0, x, slope * x)


def _seq_mlp_kernel(x_ref, wt_ref, bt_ref, wct_ref, bc_ref, out_ref, *, b, c_in, c_out):
    # x_ref:   (T_IN, B*C_IN)   whole batch, time axis leading, features on lanes
    # wt_ref:  (T_OUT, T_IN)    time_embedding weight (PyTorch layout)
    # bt_ref:  (T_OUT, 1)       time_embedding bias (column vector)
    # wct_ref: (C_IN, C_OUT)    channel_embedding weight, pre-transposed
    # bc_ref:  (1, C_OUT)       channel_embedding bias (row vector)
    # out_ref: (T_OUT, B*C_OUT) single lane-dense output slab

    # Layer 1: one MXU dot covering the whole batch (contraction over T_IN).
    z = jnp.dot(wt_ref[...], x_ref[...], preferred_element_type=jnp.float32)
    z = _leaky_relu(z + bt_ref[...])  # (T_OUT, B*C_IN)

    wct = wct_ref[...]
    bc = bc_ref[...]

    # Layer 2: per-batch contraction over C_IN on the in-vreg intermediate,
    # results concatenated along lanes so the store is a single 2-D slab.
    outs = []
    for i in range(b):
        zi = z[:, i * c_in:(i + 1) * c_in]                      # (T_OUT, C_IN)
        yi = jnp.dot(zi, wct, preferred_element_type=jnp.float32) + bc
        outs.append(_leaky_relu(yi))                            # (T_OUT, C_OUT)
    out_ref[...] = outs[0] if b == 1 else jnp.concatenate(outs, axis=1)


def prepare_params(wt, bt, wc, bc):
    """One-time parameter prep (hoisted off the per-call hot path)."""
    t_out = wt.shape[0]
    c_out = wc.shape[0]
    return {
        "wt": wt,                          # (T_OUT, T_IN)
        "bt_col": bt.reshape(t_out, 1),    # broadcast over C_IN
        "wct": wc.T,                       # (C_IN, C_OUT)
        "bc_row": bc.reshape(1, c_out),    # broadcast over T_OUT
    }


@jax.jit
def seq_mlp_block_forward(x, params):
    """x: (B, T_IN, C_IN), params from prepare_params()  ->  (B, T_OUT, C_OUT)."""
    B, T_IN, C_IN = x.shape
    T_OUT = params["wt"].shape[0]
    C_OUT = params["wct"].shape[1]

    # Layout plumbing: present x as one (T_IN, B*C_IN) slab so layer 1 is a
    # single lane-dense matmul for the whole batch.
    x2d = jnp.transpose(x, (1, 0, 2)).reshape(T_IN, B * C_IN)

    out2d = pl.pallas_call(
        functools.partial(_seq_mlp_kernel, b=B, c_in=C_IN, c_out=C_OUT),
        out_shape=jax.ShapeDtypeStruct((T_OUT, B * C_OUT), jnp.float32),
        # No grid: single invocation, full arrays resident in VMEM
        # (total footprint ~10 KB, far under any generation's VMEM limit).
    )(x2d, params["wt"], params["bt_col"], params["wct"], params["bc_row"])

    # Back to the module's (B, T_OUT, C_OUT) layout.
    return jnp.transpose(out2d.reshape(T_OUT, B, C_OUT), (1, 0, 2))


def _reference_forward(x, wt, bt, wc, bc):
    """Pure-JAX replica of the PyTorch forward (with explicit permutes)."""
    xp = jnp.transpose(x, (0, 2, 1))            # (B, C_IN, T_IN)
    y1 = _leaky_relu(xp @ wt.T + bt)            # (B, C_IN, T_OUT)
    y1p = jnp.transpose(y1, (0, 2, 1))          # (B, T_OUT, C_IN)
    return _leaky_relu(y1p @ wc.T + bc)         # (B, T_OUT, C_OUT)


def init_params(key, t_in, t_out, c_in, c_out):
    """PyTorch nn.Linear default init: uniform(-1/sqrt(fan_in), 1/sqrt(fan_in))."""
    k1, k2, k3, k4 = jax.random.split(key, 4)
    bt_bound = 1.0 / math.sqrt(t_in)
    bc_bound = 1.0 / math.sqrt(c_in)
    wt = jax.random.uniform(k1, (t_out, t_in), jnp.float32, -bt_bound, bt_bound)
    bt = jax.random.uniform(k2, (t_out,), jnp.float32, -bt_bound, bt_bound)
    wc = jax.random.uniform(k3, (c_out, c_in), jnp.float32, -bc_bound, bc_bound)
    bc = jax.random.uniform(k4, (c_out,), jnp.float32, -bc_bound, bc_bound)
    return wt, bt, wc, bc


if __name__ == "__main__":
    key = jax.random.PRNGKey(0)
    B, T_IN, T_OUT, C_IN, C_OUT = 2, 8, 16, 16, 32

    k_x, k_p = jax.random.split(key)
    x = jax.random.normal(k_x, (B, T_IN, C_IN), dtype=jnp.float32)
    wt, bt, wc, bc = init_params(k_p, T_IN, T_OUT, C_IN, C_OUT)

    params = prepare_params(wt, bt, wc, bc)   # hoisted: done once, not per call
    out = seq_mlp_block_forward(x, params)
    out = jax.block_until_ready(out)

    assert out.shape == (B, T_OUT, C_OUT) and out.dtype == jnp.float32
    ref = _reference_forward(x, wt, bt, wc, bc)
    assert jnp.max(jnp.abs(out - ref)) < 1e-5, "mismatch vs pure-JAX reference"

    print("KERNEL_OK")
</pallas_src>

<mosaic_0001>
module attributes {stable_mosaic.version = 11 : i64} {
  func.func @_seq_mlp_kernel(%arg0: memref<8x32xf32, #tpu.memory_space<vmem>>, %arg1: memref<16x8xf32, #tpu.memory_space<vmem>>, %arg2: memref<16x1xf32, #tpu.memory_space<vmem>>, %arg3: memref<16x32xf32, #tpu.memory_space<vmem>>, %arg4: memref<1x32xf32, #tpu.memory_space<vmem>>, %arg5: memref<16x64xf32, #tpu.memory_space<vmem>>) attributes {dimension_semantics = [], scalar_prefetch = 0 : i64, scratch_operands = 0 : i64, tpu.core_type = #tpu.core_type<tc>} {
    %c0 = arith.constant 0 : index
    %c0_0 = arith.constant 0 : index
    %0 = vector.load %arg1[%c0, %c0_0] : memref<16x8xf32, #tpu.memory_space<vmem>>, vector<16x8xf32>
    %c0_1 = arith.constant 0 : index
    %c0_2 = arith.constant 0 : index
    %1 = vector.load %arg0[%c0_1, %c0_2] : memref<8x32xf32, #tpu.memory_space<vmem>>, vector<8x32xf32>
    %cst = arith.constant dense<0.000000e+00> : vector<16x32xf32>
    %2 = tpu.matmul %0, %1, %cst {dimension_numbers = #tpu.dot_dimension_numbers<[1], [0], [0], [1], [0, 0, 1, 1], [], []>} : vector<16x8xf32>, vector<8x32xf32>, vector<16x32xf32> -> vector<16x32xf32>
    %c0_3 = arith.constant 0 : index
    %c0_4 = arith.constant 0 : index
    %3 = vector.load %arg2[%c0_3, %c0_4] : memref<16x1xf32, #tpu.memory_space<vmem>>, vector<16x1xf32>
    %4 = vector.broadcast %3 : vector<16x1xf32> to vector<16x32xf32>
    %5 = arith.addf %2, %4 : vector<16x32xf32>
    %cst_5 = arith.constant 0.000000e+00 : f32
    %6 = vector.broadcast %cst_5 : f32 to vector<16x32xf32>
    %7 = arith.cmpf ogt, %5, %6 : vector<16x32xf32>
    %cst_6 = arith.constant 0.00999999977 : f32
    %8 = vector.broadcast %cst_6 : f32 to vector<16x32xf32>
    %9 = arith.mulf %8, %5 : vector<16x32xf32>
    %10 = arith.select %7, %5, %9 : vector<16x32xi1>, vector<16x32xf32>
    %c0_7 = arith.constant 0 : index
    %c0_8 = arith.constant 0 : index
    %11 = vector.load %arg3[%c0_7, %c0_8] : memref<16x32xf32, #tpu.memory_space<vmem>>, vector<16x32xf32>
    %c0_9 = arith.constant 0 : index
    %c0_10 = arith.constant 0 : index
    %12 = vector.load %arg4[%c0_9, %c0_10] : memref<1x32xf32, #tpu.memory_space<vmem>>, vector<1x32xf32>
    %13 = vector.extract_strided_slice %10 {offsets = [0, 0], sizes = [16, 16], strides = [1, 1]} : vector<16x32xf32> to vector<16x16xf32>
    %cst_11 = arith.constant dense<0.000000e+00> : vector<16x32xf32>
    %14 = tpu.matmul %13, %11, %cst_11 {dimension_numbers = #tpu.dot_dimension_numbers<[1], [0], [0], [1], [0, 0, 1, 1], [], []>} : vector<16x16xf32>, vector<16x32xf32>, vector<16x32xf32> -> vector<16x32xf32>
    %15 = vector.broadcast %12 : vector<1x32xf32> to vector<16x32xf32>
    %16 = arith.addf %14, %15 : vector<16x32xf32>
    %cst_12 = arith.constant 0.000000e+00 : f32
    %17 = vector.broadcast %cst_12 : f32 to vector<16x32xf32>
    %18 = arith.cmpf ogt, %16, %17 : vector<16x32xf32>
    %cst_13 = arith.constant 0.00999999977 : f32
    %19 = vector.broadcast %cst_13 : f32 to vector<16x32xf32>
    %20 = arith.mulf %19, %16 : vector<16x32xf32>
    %21 = arith.select %18, %16, %20 : vector<16x32xi1>, vector<16x32xf32>
    %22 = vector.extract_strided_slice %10 {offsets = [0, 16], sizes = [16, 16], strides = [1, 1]} : vector<16x32xf32> to vector<16x16xf32>
    %cst_14 = arith.constant dense<0.000000e+00> : vector<16x32xf32>
    %23 = tpu.matmul %22, %11, %cst_14 {dimension_numbers = #tpu.dot_dimension_numbers<[1], [0], [0], [1], [0, 0, 1, 1], [], []>} : vector<16x16xf32>, vector<16x32xf32>, vector<16x32xf32> -> vector<16x32xf32>
    %24 = vector.broadcast %12 : vector<1x32xf32> to vector<16x32xf32>
    %25 = arith.addf %23, %24 : vector<16x32xf32>
    %cst_15 = arith.constant 0.000000e+00 : f32
    %26 = vector.broadcast %cst_15 : f32 to vector<16x32xf32>
    %27 = arith.cmpf ogt, %25, %26 : vector<16x32xf32>
    %cst_16 = arith.constant 0.00999999977 : f32
    %28 = vector.broadcast %cst_16 : f32 to vector<16x32xf32>
    %29 = arith.mulf %28, %25 : vector<16x32xf32>
    %30 = arith.select %27, %25, %29 : vector<16x32xi1>, vector<16x32xf32>
    %31 = tpu.concatenate %21, %30 in 1 : vector<16x32xf32>, vector<16x32xf32> -> vector<16x64xf32>
    %c0_17 = arith.constant 0 : index
    %c0_18 = arith.constant 0 : index
    %32 = vector.load %arg5[%c0_17, %c0_18] : memref<16x64xf32, #tpu.memory_space<vmem>>, vector<16x64xf32>
    tpu.vector_store %arg5[%c0_17, %c0_18], %31 {strides = array<i32>} : memref<16x64xf32, #tpu.memory_space<vmem>>, vector<16x64xf32>,
    return
  }
}

</mosaic_0001>

<bundles_post_ra>
// kernel: seq_mlp_block_forward.1
= control target key start
LH: loop header
LB: loop body
LE: loop exit
PB: predicated region body
PF: predicated region fallthrough
CT: control target
= control target key end

     0   :  { %vm35_vm0 = vcmask 64512   ;;  %v376_v3 = vmov 0   ;;  %vm132_vm3 = vcmask 130048   ;;  %s378_s6 = smov 32   ;;  %vm317_vm8 = vcmask 261120   ;;  %s439_s0 = inlined_call_operand.vmem [shape: f32[8,32], index: 0, kind: input, shape index: {}]   ;;  %s440_s1 = inlined_call_operand.vmem [shape: f32[16,8], index: 1, kind: input, shape index: {}]   ;;  %s441_s2 = inlined_call_operand.vmem [shape: f32[16,1], index: 2, kind: input, shape index: {}]   ;;  %s442_s3 = inlined_call_operand.vmem [shape: f32[16,32], index: 3, kind: input, shape index: {}]   ;;  %s443_s4 = inlined_call_operand.vmem [shape: f32[1,32], index: 4, kind: input, shape index: {}]   ;;  %s444_s5 = inlined_call_operand.vmem [shape: f32[16,64], index: 5, kind: output, shape index: {}]  }
   0x1   :  { %v22_v0 = vld [vmem:[%s439_s0] sm:$0xff]  ;;  %v21_v2 = vld [vmem:[%s440_s1 + $0x8] sm:$0xff]  ;;  %375 = vset.pattern.permute.xlu0 %v376_v3  ;;  %vm320_vm9 = vcmask 523264  }
   0x2   :  { %v20_v1 = vld [vmem:[%s440_s1] sm:$0xff]  ;;  %345 = vmatprep.subr.mxu0 %v22_v0  ;;  %v24_v5 = vld [vmem:[%s441_s2 + $0x8] sm:$0xff] }
   0x3   :  { %347 = vmatprep.mubr.msk.f32.mxu0 %vm35_vm0, %v20_v1  ;;  %v23_v4 = vld [vmem:[%s441_s2] sm:$0xff]  ;;  %346 = vmatpush3.msra.mxu0 %v22_v0  ;;  %v124_v7 = vld [vmem:[%s442_s3 + $0x8] sm:$0xff]  ;;  %s377_s2 = smov 112  }
   0x4   :  { %27 = vperm.xlu0 %375, %v23_v4   ;;  %348 = vmatmul.mubr.msk.f32.vlgmr.msra.gmra.mrb[0].mxu0 %vm35_vm0, %v21_v2  ;;  %v123_v6 = vld [vmem:[%s442_s3] sm:$0xff] }
   0x5   :  { %v364_v8 = vpack.c.bf16 %v124_v7, %v123_v6  ;;  %v329_v23 = vld [vmem:[%s443_s4] ss:$0 sm:$0xff] }
   0x7   :  { %365 = vmatprep.subr.bf16.mxu1 %v364_v8  ;;  %369 = vmatprep.subr.bf16.mxu0 %v364_v8 }
   0x8   :  { %32 = vperm.xlu0 %375, %v24_v5   ;;  %367 = vmatpush3.bf16.msra.mxu1 %v364_v8 }
   0x9   :  { %371 = vmatpush3.bf16.msra.mxu0 %v364_v8 }
  0x83   :  { %v28_v9 = vpop.permute.xlu0 %27 }
  0x87   :  { %v33_v10 = vpop.permute.xlu0 %32 }
  0xd7   :  { %v349_v11 = vpop.f32.mrb[0].mxu0 }
  0xd8   :  { %v114_v12 = vadd.f32 %v349_v11, %v33_v10  ;;  %v108_v13 = vpop.f32.mrb[1].mxu0 }
  0xd9   :  { %v109_v14 = vadd.f32 %v108_v13, %v28_v9 }
  0xda   :  { %v120_v15 = vmul.f32 0.01, %v114_v12  ;;  %vm118_vm1 = vcmp.gt.f32.partialorder %v114_v12, 0.0 }
  0xdb   :  { %vm117_vm2 = vcmp.gt.f32.partialorder %v109_v14, 0.0  ;;  %v119_v16 = vmul.f32 0.01, %v109_v14 }
  0xdc   :  { %v122_v18 = vsel %vm118_vm1, %v114_v12, %v120_v15 }
  0xdd   :  { %v121_v17 = vsel %vm117_vm2, %v109_v14, %v119_v16 }
  0xde   :  { %220 = vrot.lane.b32.xlu1 %v121_v17, %s377_s2  ;;  %354 = vmatprep.mubr.msk.f32.mxu1 %vm132_vm3, %v121_v17 }
  0xdf   :  { %355 = vmatmul.mubr.msk.f32.vlgmr.msra.gmra.mrb[0].mxu1 %vm132_vm3, %v122_v18 }
  0xe2   :  { %222 = vrot.lane.b32.xlu1 %v122_v18, %s377_s2 }
 0x150   :  { %v221_v19 = vpop.permute.xlu1 %220 }
 0x151   :  { %361 = vmatprep.mubr.msk.f32.mxu0 %vm132_vm3, %v221_v19 }
 0x154   :  { %v223_v20 = vpop.permute.xlu1 %222 }
 0x155   :  { %362 = vmatmul.mubr.msk.f32.vlgmr.msra.gmra.mrb[2].mxu0 %vm132_vm3, %v223_v20 }
 0x1b2   :  { %v356_v21 = vpop.f32.mrb[0].mxu1 }
 0x1b3   :  { %v205_v22 = vpop.f32.mrb[1].mxu1  ;;  %v211_v32 = vadd.f32 %v356_v21, %v329_v23 }
 0x1b4   :  { %v206_v33 = vadd.f32 %v329_v23, %v205_v22 }
 0x1b5   :  { %v217_v34 = vmul.f32 0.01, %v211_v32  ;;  %vm215_vm6 = vcmp.gt.f32.partialorder %v211_v32, 0.0 }
 0x1b6   :  { %v216_v35 = vmul.f32 0.01, %v206_v33  ;;  %vm214_vm7 = vcmp.gt.f32.partialorder %v206_v33, 0.0 }
 0x1b7   :  { %v219_v37 = vsel %vm215_vm6, %v211_v32, %v217_v34 }
 0x1b8   :  { %v218_v40 = vsel %vm214_vm7, %v206_v33, %v216_v35 }
 0x228   :  { %v363_v24 = vpop.f32.mrb[2].mxu0 }
 0x229   :  { %v300_v25 = vadd.f32 %v363_v24, %v329_v23  ;;  %v294_v26 = vpop.f32.mrb[3].mxu0 }
 0x22a   :  { %v295_v27 = vadd.f32 %v329_v23, %v294_v26 }
 0x22b   :  { %v306_v28 = vmul.f32 0.01, %v300_v25  ;;  %vm304_vm4 = vcmp.gt.f32.partialorder %v300_v25, 0.0 }
 0x22c   :  { %v305_v29 = vmul.f32 0.01, %v295_v27  ;;  %vm303_vm5 = vcmp.gt.f32.partialorder %v295_v27, 0.0 }
 0x22d   :  { %v308_v30 = vsel %vm304_vm4, %v300_v25, %v306_v28 }
 0x22e   :  { %313 = vrot.lane.b32.xlu1 %v308_v30, %s378_s6  ;;  %v307_v31 = vsel %vm303_vm5, %v295_v27, %v305_v29 }
 0x22f   :  { %311 = vrot.lane.b32.xlu0 %v307_v31, %s378_s6 }
 0x2a0   :  { %v314_v36 = vpop.permute.xlu1 %313 }
 0x2a1   :  { %v319_v38 = vsel %vm317_vm8, %v219_v37, %v314_v36  ;;  %v312_v39 = vpop.permute.xlu0 %311 }
 0x2a2   :  { %322 = vst.msk [vmem:[%s444_s5 + $0x8] sm:$0xff] %vm320_vm9, %v319_v38  ;;  %v318_v41 = vsel %vm317_vm8, %v218_v40, %v312_v39 }
 0x2a3   :  { %321 = vst.msk [vmem:[%s444_s5] sm:$0xff] %vm320_vm9, %v318_v41 }

</bundles_post_ra>
